<compile_context>
chip_gen: v7x
topology: tpu7x:2x2x1
jax: 0.10.0
libtpu: 0.0.40
codegen_flags: <defaults>
</compile_context>

<pallas_src>
import math

import jax
import jax.numpy as jnp
from jax.experimental import pallas as pl
from jax.experimental.pallas import tpu as pltpu


INPUT_SIZE = 13  # fixed by the module: CustomLSTM(13, decoder_hidden_size)


def _round_up(x, m):
    return (x + m - 1) // m * m


# ----------------------------------------------------------------------------
# Pallas kernel: T chained LSTM-cell steps, one fused MXU push per step.
# ----------------------------------------------------------------------------
def _decoder_lstm_seq_kernel(x_ref, h0_ref, c0_ref, w_ref, hy_ref, state_ref,
                             act_scr):
    t = pl.program_id(0)
    H = h0_ref.shape[-1]
    I_pad = x_ref.shape[-1]
    h_off = I_pad
    c_off = I_pad + H
    bias_col = I_pad + 2 * H   # the "ones" column that picks up the fused bias

    @pl.when(t == 0)
    def _init():
        # Zero the whole activation scratch (also zeroes the K padding cols),
        # load the initial state, and set the bias pick-up column to 1.
        act_scr[...] = jnp.zeros_like(act_scr)
        act_scr[:, h_off:c_off] = h0_ref[...]
        act_scr[:, c_off:bias_col] = c0_ref[...]
        act_scr[:, bias_col:bias_col + 1] = jnp.ones(
            (act_scr.shape[0], 1), act_scr.dtype)

    # Current timestep's (already zero-padded) input into the x slot.
    act_scr[:, 0:I_pad] = x_ref[0]

    # Single MXU push: (B_pad, K_pad) @ (K_pad, 4H) -> (B_pad, 4H)
    #   z[:, 0:3H]  = x@W_ih^T + h@W_hh^T + c@W_ch^T + (b_ih+b_hh+b_ch)
    #   z[:, 3H:4H] = x@(W_gh^T + b_gh) + h@(W_ghh^T + b_ghh)
    z = jnp.dot(act_scr[...], w_ref[...], preferred_element_type=jnp.float32)

    sig = jax.nn.sigmoid(z[:, 0:3 * H])
    ingate = sig[:, 0:H]
    forgetgate = sig[:, H:2 * H]
    outgate = sig[:, 2 * H:3 * H]
    cellgate = jnp.tanh(z[:, 3 * H:4 * H])

    cx = act_scr[:, c_off:bias_col]
    cy = forgetgate * cx + ingate * cellgate
    hy = outgate * jnp.tanh(cy)

    # Carry the state to the next grid step (stays in VMEM, no HBM roundtrip).
    act_scr[:, h_off:c_off] = hy
    act_scr[:, c_off:bias_col] = cy

    # Per-step hy (T-indexed output block) -- single full-view store.
    hy_ref[...] = hy[None].astype(hy_ref.dtype)
    # Final state (grid-resident output block) -- single full-view store.
    state_ref[...] = jnp.concatenate([hy, cy], axis=-1).astype(state_ref.dtype)


# ----------------------------------------------------------------------------
# Parameters (deterministic, mirrors CustomLSTM.__init__/init_weights shapes)
# ----------------------------------------------------------------------------
def init_decoder_params(key, hidden_size, dtype=jnp.float32):
    stdv = 1.0 / math.sqrt(hidden_size)
    ks = jax.random.split(key, 10)
    H, I = hidden_size, INPUT_SIZE
    u = lambda k, shape, lo, hi: jax.random.uniform(k, shape, dtype, lo, hi)
    return dict(
        weight_ih=u(ks[0], (3 * H, I), -stdv, stdv),
        weight_hh=u(ks[1], (3 * H, H), -stdv, stdv),
        weight_ch=u(ks[2], (3 * H, H), -stdv, stdv),
        weight_gh=u(ks[3], (H, I), -stdv, stdv),
        weight_ghh=u(ks[4], (H, H), -stdv, stdv),
        bias_ih=u(ks[5], (3 * H,), 0.0, 1.0),
        bias_hh=u(ks[6], (3 * H,), 0.0, 1.0),
        bias_ch=u(ks[7], (3 * H,), 0.0, 1.0),
        bias_gh=u(ks[8], (H,), 0.0, 1.0),
        bias_ghh=u(ks[9], (H,), 0.0, 1.0),
    )


def pack_decoder_params(params, mxu_dtype=jnp.float32):
    """Fold ALL step-invariant weight/bias math once: transposes, the torch
    `mm(x, W.t() + b)` bias-into-weight quirk, the summed gate bias (as one
    extra 'ones' row), and the K / input-width padding.  For large H on
    v6e/v7x pass mxu_dtype=jnp.bfloat16 to halve the resident slab."""
    H = params["weight_ghh"].shape[0]
    I = params["weight_ih"].shape[1]
    I_pad = _round_up(I, 8)
    K_used = I_pad + 2 * H + 1                 # x | h | c | bias-ones
    K_pad = _round_up(K_used, 128)             # lane/sublane aligned contraction
    f32 = lambda a: jnp.asarray(a, jnp.float32)

    w = jnp.zeros((K_pad, 4 * H), jnp.float32)
    # x rows
    w = w.at[0:I, 0:3 * H].set(f32(params["weight_ih"]).T)
    w = w.at[0:I, 3 * H:4 * H].set(
        f32(params["weight_gh"]).T + f32(params["bias_gh"])[None, :])
    # h rows
    w = w.at[I_pad:I_pad + H, 0:3 * H].set(f32(params["weight_hh"]).T)
    w = w.at[I_pad:I_pad + H, 3 * H:4 * H].set(
        f32(params["weight_ghh"]).T + f32(params["bias_ghh"])[None, :])
    # c rows (gate block only; cx does not feed cellgate)
    w = w.at[I_pad + H:I_pad + 2 * H, 0:3 * H].set(f32(params["weight_ch"]).T)
    # bias "ones" row (gate block only; cellgate bias already folded above)
    bias_row = I_pad + 2 * H
    w = w.at[bias_row, 0:3 * H].set(
        f32(params["bias_ih"]) + f32(params["bias_hh"]) + f32(params["bias_ch"]))

    return {"w": w.astype(mxu_dtype), "hidden_size": H, "input_size": I,
            "i_pad": I_pad, "k_pad": K_pad}


# ----------------------------------------------------------------------------
# Wrappers
# ----------------------------------------------------------------------------
def decoder_steps(packed, xs, h0, c0):
    """Run T chained LSTM-cell steps in ONE pallas_call.
    xs: (T, B, 13); h0, c0: (B, H).
    Returns (hy_all (T, B, H), (hy_T (B, H), cy_T (B, H)))."""
    T, B, I = xs.shape
    H = packed["hidden_size"]
    I_pad = packed["i_pad"]
    K_pad = packed["k_pad"]
    B_pad = max(8, _round_up(B, 8))
    f32 = jnp.float32

    # One-time (per call, amortized over T) zero-padding to aligned shapes.
    xs_p = jnp.zeros((T, B_pad, I_pad), f32).at[:, :B, :I].set(xs.astype(f32))
    h0_p = jnp.zeros((B_pad, H), f32).at[:B].set(h0.astype(f32))
    c0_p = jnp.zeros((B_pad, H), f32).at[:B].set(c0.astype(f32))

    cost = pl.CostEstimate(
        flops=int(T * (2 * B_pad * K_pad * 4 * H + 10 * B_pad * H)),
        transcendentals=int(T * 5 * B_pad * H),
        bytes_accessed=int(4 * (T * B_pad * I_pad + 2 * B_pad * H
                                + K_pad * 4 * H + T * B_pad * H
                                + B_pad * 2 * H)),
    )

    hy_all, state = pl.pallas_call(
        _decoder_lstm_seq_kernel,
        grid=(T,),
        in_specs=[
            pl.BlockSpec((1, B_pad, I_pad), lambda t: (t, 0, 0)),   # x_t
            pl.BlockSpec((B_pad, H), lambda t: (0, 0)),             # h0
            pl.BlockSpec((B_pad, H), lambda t: (0, 0)),             # c0
            pl.BlockSpec((K_pad, 4 * H), lambda t: (0, 0)),         # weights (resident)
        ],
        out_specs=[
            pl.BlockSpec((1, B_pad, H), lambda t: (t, 0, 0)),       # hy per step
            pl.BlockSpec((B_pad, 2 * H), lambda t: (0, 0)),         # final [hy|cy]
        ],
        out_shape=[
            jax.ShapeDtypeStruct((T, B_pad, H), f32),
            jax.ShapeDtypeStruct((B_pad, 2 * H), f32),
        ],
        scratch_shapes=[pltpu.VMEM((B_pad, K_pad), f32)],           # [x|h|c|1|pad]
        compiler_params=pltpu.CompilerParams(
            dimension_semantics=("arbitrary",)),
        cost_estimate=cost,
    )(xs_p, h0_p, c0_p, packed["w"])

    hy_all = hy_all[:, :B, :]
    hy_T = state[:B, 0:H]
    cy_T = state[:B, H:2 * H]
    return hy_all, (hy_T, cy_T)


def decoder_forward(packed, input_tensor, decoder_hidden):
    """Module-forward semantics: input_tensor (B, 1, 13), decoder_hidden
    (hx, cx) each (1, B, H).  Returns (decoder_output, (hy, cy)) with
    decoder_output == hy, shape (B, H)."""
    hx0, cx0 = decoder_hidden
    x = jnp.squeeze(input_tensor, axis=1)   # (B, 13)
    hx = jnp.squeeze(hx0, axis=0)           # (B, H)
    cx = jnp.squeeze(cx0, axis=0)           # (B, H)
    _, (hy, cy) = decoder_steps(packed, x[None], hx, cx)
    return hy, (hy, cy)


# ----------------------------------------------------------------------------
# Pure-JAX reference (mirrors the torch code 1:1) for correctness checks.
# ----------------------------------------------------------------------------
def _lstm_cell_ref(params, x, hx, cx):
    H = hx.shape[1]
    gates = (x @ params["weight_ih"].T + params["bias_ih"]
             + hx @ params["weight_hh"].T + params["bias_hh"]
             + cx @ params["weight_ch"].T + params["bias_ch"])
    ingate = jax.nn.sigmoid(gates[:, 0:H])
    forgetgate = jax.nn.sigmoid(gates[:, H:2 * H])
    outgate = jax.nn.sigmoid(gates[:, 2 * H:3 * H])
    cellgate = jnp.tanh(x @ (params["weight_gh"].T + params["bias_gh"])
                        + hx @ (params["weight_ghh"].T + params["bias_ghh"]))
    cy = forgetgate * cx + ingate * cellgate
    hy = outgate * jnp.tanh(cy)
    return hy, cy


def decoder_forward_ref(params, input_tensor, decoder_hidden):
    hx0, cx0 = decoder_hidden
    x = jnp.squeeze(input_tensor, axis=1)
    hx = jnp.squeeze(hx0, axis=0)
    cx = jnp.squeeze(cx0, axis=0)
    hy, cy = _lstm_cell_ref(params, x, hx, cx)
    return hy, (hy, cy)


if __name__ == "__main__":
    B = 4                 # batch_size
    H = 32                # decoder_hidden_size
    T = 8                 # chained decode steps (rollout demo)

    key = jax.random.PRNGKey(0)
    k_par, k_x, k_h, k_c, k_seq = jax.random.split(key, 5)

    params = init_decoder_params(k_par, H)
    packed = pack_decoder_params(params)      # step-invariant, done once

    # --- single step: exact module-forward semantics ------------------------
    input_tensor = jax.random.normal(k_x, (B, 1, INPUT_SIZE), jnp.float32)
    hx = jax.random.normal(k_h, (1, B, H), jnp.float32)
    cx = jax.random.normal(k_c, (1, B, H), jnp.float32)

    out, (hy, cy) = decoder_forward(packed, input_tensor, (hx, cx))
    jax.block_until_ready((out, hy, cy))

    ref_out, (ref_hy, ref_cy) = decoder_forward_ref(params, input_tensor,
                                                    (hx, cx))
    assert jnp.allclose(out, ref_out, atol=1e-4, rtol=1e-4)
    assert jnp.allclose(hy, ref_hy, atol=1e-4, rtol=1e-4)
    assert jnp.allclose(cy, ref_cy, atol=1e-4, rtol=1e-4)

    # --- T chained steps in one pallas_call (amortized launch / weight DMA) --
    xs = jax.random.normal(k_seq, (T, B, INPUT_SIZE), jnp.float32)
    h0 = jnp.squeeze(hx, axis=0)
    c0 = jnp.squeeze(cx, axis=0)
    hy_all, (hT, cT) = decoder_steps(packed, xs, h0, c0)
    jax.block_until_ready((hy_all, hT, cT))

    rh, rc = h0, c0
    ref_hy_all = []
    for t in range(T):
        rh, rc = _lstm_cell_ref(params, xs[t], rh, rc)
        ref_hy_all.append(rh)
    ref_hy_all = jnp.stack(ref_hy_all, axis=0)

    assert jnp.allclose(hy_all, ref_hy_all, atol=1e-3, rtol=1e-3)
    assert jnp.allclose(hT, rh, atol=1e-3, rtol=1e-3)
    assert jnp.allclose(cT, rc, atol=1e-3, rtol=1e-3)

    print("KERNEL_OK")
</pallas_src>

<mosaic_0001>
module attributes {stable_mosaic.version = 11 : i64} {
  func.func @_decoder_lstm_seq_kernel(%arg0: i32, %arg1: memref<1x8x16xf32, #tpu.memory_space<vmem>>, %arg2: memref<8x32xf32, #tpu.memory_space<vmem>>, %arg3: memref<8x32xf32, #tpu.memory_space<vmem>>, %arg4: memref<128x128xf32, #tpu.memory_space<vmem>>, %arg5: memref<1x8x32xf32, #tpu.memory_space<vmem>>, %arg6: memref<8x64xf32, #tpu.memory_space<vmem>>, %arg7: memref<8x128xf32, #tpu.memory_space<vmem>>) attributes {dimension_semantics = [#tpu.dimension_semantics<arbitrary>], iteration_bounds = array<i64: 1>, scalar_prefetch = 0 : i64, scratch_operands = 1 : i64, tpu.core_type = #tpu.core_type<tc>, window_params = [{transform_indices = @transform_0, window_bounds = array<i64: 1, 8, 16>}, {pipeline_mode = #tpu.pipeline_mode<synchronous>, transform_indices = @transform_1, window_bounds = array<i64: 8, 32>}, {pipeline_mode = #tpu.pipeline_mode<synchronous>, transform_indices = @transform_2, window_bounds = array<i64: 8, 32>}, {pipeline_mode = #tpu.pipeline_mode<synchronous>, transform_indices = @transform_3, window_bounds = array<i64: 128, 128>}, {transform_indices = @transform_4, window_bounds = array<i64: 1, 8, 32>}, {pipeline_mode = #tpu.pipeline_mode<synchronous>, transform_indices = @transform_5, window_bounds = array<i64: 8, 64>}]} {
    %c0_i32 = arith.constant 0 : i32
    %0 = arith.cmpi eq, %arg0, %c0_i32 : i32
    %1 = arith.extui %0 : i1 to i32
    %c0_i32_0 = arith.constant 0 : i32
    %2 = arith.cmpi ne, %1, %c0_i32_0 : i32
    scf.if %2 {
      %cst_19 = arith.constant 0.000000e+00 : f32
      %32 = vector.broadcast %cst_19 : f32 to vector<8x128xf32>
      %c0_20 = arith.constant 0 : index
      %c0_21 = arith.constant 0 : index
      %33 = vector.load %arg7[%c0_20, %c0_21] : memref<8x128xf32, #tpu.memory_space<vmem>>, vector<8x128xf32>
      tpu.vector_store %arg7[%c0_20, %c0_21], %32 {strides = array<i32>} : memref<8x128xf32, #tpu.memory_space<vmem>>, vector<8x128xf32>,
      %c0_22 = arith.constant 0 : index
      %c0_23 = arith.constant 0 : index
      %34 = vector.load %arg2[%c0_22, %c0_23] : memref<8x32xf32, #tpu.memory_space<vmem>>, vector<8x32xf32>
      %c0_24 = arith.constant 0 : index
      %c16_25 = arith.constant 16 : index
      %35 = vector.load %arg7[%c0_24, %c16_25] : memref<8x128xf32, #tpu.memory_space<vmem>>, vector<8x32xf32>
      tpu.vector_store %arg7[%c0_24, %c16_25], %34 {strides = array<i32>} : memref<8x128xf32, #tpu.memory_space<vmem>>, vector<8x32xf32>,
      %c0_26 = arith.constant 0 : index
      %c0_27 = arith.constant 0 : index
      %36 = vector.load %arg3[%c0_26, %c0_27] : memref<8x32xf32, #tpu.memory_space<vmem>>, vector<8x32xf32>
      %c0_28 = arith.constant 0 : index
      %c48_29 = arith.constant 48 : index
      %37 = vector.load %arg7[%c0_28, %c48_29] : memref<8x128xf32, #tpu.memory_space<vmem>>, vector<8x32xf32>
      tpu.vector_store %arg7[%c0_28, %c48_29], %36 {strides = array<i32>} : memref<8x128xf32, #tpu.memory_space<vmem>>, vector<8x32xf32>,
      %cst_30 = arith.constant 1.000000e+00 : f32
      %38 = vector.broadcast %cst_30 : f32 to vector<8x1xf32>
      %c0_31 = arith.constant 0 : index
      %c80 = arith.constant 80 : index
      %39 = vector.load %arg7[%c0_31, %c80] : memref<8x128xf32, #tpu.memory_space<vmem>>, vector<8x1xf32>
      tpu.vector_store %arg7[%c0_31, %c80], %38 {strides = array<i32>} : memref<8x128xf32, #tpu.memory_space<vmem>>, vector<8x1xf32>,
    } else {
    }
    %c0 = arith.constant 0 : index
    %c0_1 = arith.constant 0 : index
    %c0_2 = arith.constant 0 : index
    %3 = vector.load %arg1[%c0, %c0_1, %c0_2] : memref<1x8x16xf32, #tpu.memory_space<vmem>>, vector<1x8x16xf32>
    %4 = vector.shape_cast %3 : vector<1x8x16xf32> to vector<8x16xf32>
    %c0_3 = arith.constant 0 : index
    %c0_4 = arith.constant 0 : index
    %5 = vector.load %arg7[%c0_3, %c0_4] : memref<8x128xf32, #tpu.memory_space<vmem>>, vector<8x16xf32>
    tpu.vector_store %arg7[%c0_3, %c0_4], %4 {strides = array<i32>} : memref<8x128xf32, #tpu.memory_space<vmem>>, vector<8x16xf32>,
    %c0_5 = arith.constant 0 : index
    %c0_6 = arith.constant 0 : index
    %6 = vector.load %arg7[%c0_5, %c0_6] : memref<8x128xf32, #tpu.memory_space<vmem>>, vector<8x128xf32>
    %c0_7 = arith.constant 0 : index
    %c0_8 = arith.constant 0 : index
    %7 = vector.load %arg4[%c0_7, %c0_8] : memref<128x128xf32, #tpu.memory_space<vmem>>, vector<128x128xf32>
    %cst = arith.constant dense<0.000000e+00> : vector<8x128xf32>
    %8 = tpu.matmul %6, %7, %cst {dimension_numbers = #tpu.dot_dimension_numbers<[1], [0], [0], [1], [0, 0, 1, 1], [], []>} : vector<8x128xf32>, vector<128x128xf32>, vector<8x128xf32> -> vector<8x128xf32>
    %9 = vector.extract_strided_slice %8 {offsets = [0, 0], sizes = [8, 96], strides = [1, 1]} : vector<8x128xf32> to vector<8x96xf32>
    %10 = arith.negf %9 : vector<8x96xf32>
    %11 = math.exp %10 : vector<8x96xf32>
    %cst_9 = arith.constant 1.000000e+00 : f32
    %12 = vector.broadcast %cst_9 : f32 to vector<8x96xf32>
    %13 = arith.addf %12, %11 : vector<8x96xf32>
    %14 = arith.divf %12, %13 : vector<8x96xf32>
    %15 = vector.extract_strided_slice %14 {offsets = [0, 0], sizes = [8, 32], strides = [1, 1]} : vector<8x96xf32> to vector<8x32xf32>
    %16 = vector.extract_strided_slice %14 {offsets = [0, 32], sizes = [8, 32], strides = [1, 1]} : vector<8x96xf32> to vector<8x32xf32>
    %17 = vector.extract_strided_slice %14 {offsets = [0, 64], sizes = [8, 32], strides = [1, 1]} : vector<8x96xf32> to vector<8x32xf32>
    %18 = vector.extract_strided_slice %8 {offsets = [0, 96], sizes = [8, 32], strides = [1, 1]} : vector<8x128xf32> to vector<8x32xf32>
    %19 = math.tanh %18 : vector<8x32xf32>
    %c0_10 = arith.constant 0 : index
    %c48 = arith.constant 48 : index
    %20 = vector.load %arg7[%c0_10, %c48] : memref<8x128xf32, #tpu.memory_space<vmem>>, vector<8x32xf32>
    %21 = arith.mulf %16, %20 : vector<8x32xf32>
    %22 = arith.mulf %15, %19 : vector<8x32xf32>
    %23 = arith.addf %21, %22 : vector<8x32xf32>
    %24 = math.tanh %23 : vector<8x32xf32>
    %25 = arith.mulf %17, %24 : vector<8x32xf32>
    %c0_11 = arith.constant 0 : index
    %c16 = arith.constant 16 : index
    %26 = vector.load %arg7[%c0_11, %c16] : memref<8x128xf32, #tpu.memory_space<vmem>>, vector<8x32xf32>
    tpu.vector_store %arg7[%c0_11, %c16], %25 {strides = array<i32>} : memref<8x128xf32, #tpu.memory_space<vmem>>, vector<8x32xf32>,
    %c0_12 = arith.constant 0 : index
    %c48_13 = arith.constant 48 : index
    %27 = vector.load %arg7[%c0_12, %c48_13] : memref<8x128xf32, #tpu.memory_space<vmem>>, vector<8x32xf32>
    tpu.vector_store %arg7[%c0_12, %c48_13], %23 {strides = array<i32>} : memref<8x128xf32, #tpu.memory_space<vmem>>, vector<8x32xf32>,
    %28 = vector.shape_cast %25 : vector<8x32xf32> to vector<1x8x32xf32>
    %c0_14 = arith.constant 0 : index
    %c0_15 = arith.constant 0 : index
    %c0_16 = arith.constant 0 : index
    %29 = vector.load %arg5[%c0_14, %c0_15, %c0_16] : memref<1x8x32xf32, #tpu.memory_space<vmem>>, vector<1x8x32xf32>
    tpu.vector_store %arg5[%c0_14, %c0_15, %c0_16], %28 {strides = array<i32>} : memref<1x8x32xf32, #tpu.memory_space<vmem>>, vector<1x8x32xf32>,
    %30 = tpu.concatenate %25, %23 in 1 : vector<8x32xf32>, vector<8x32xf32> -> vector<8x64xf32>
    %c0_17 = arith.constant 0 : index
    %c0_18 = arith.constant 0 : index
    %31 = vector.load %arg6[%c0_17, %c0_18] : memref<8x64xf32, #tpu.memory_space<vmem>>, vector<8x64xf32>
    tpu.vector_store %arg6[%c0_17, %c0_18], %30 {strides = array<i32>} : memref<8x64xf32, #tpu.memory_space<vmem>>, vector<8x64xf32>,
    return
  }
  func.func @transform_0(%arg0: i32) -> (i32, i32, i32) {
    %c0_i32 = arith.constant 0 : i32
    %c0_i32_0 = arith.constant 0 : i32
    %c0_i32_1 = arith.constant 0 : i32
    return %arg0, %c0_i32, %c0_i32_0 : i32, i32, i32
  }
  func.func @transform_1(%arg0: i32) -> (i32, i32) {
    %c0_i32 = arith.constant 0 : i32
    %c0_i32_0 = arith.constant 0 : i32
    %c0_i32_1 = arith.constant 0 : i32
    return %c0_i32, %c0_i32_0 : i32, i32
  }
  func.func @transform_2(%arg0: i32) -> (i32, i32) {
    %c0_i32 = arith.constant 0 : i32
    %c0_i32_0 = arith.constant 0 : i32
    %c0_i32_1 = arith.constant 0 : i32
    return %c0_i32, %c0_i32_0 : i32, i32
  }
  func.func @transform_3(%arg0: i32) -> (i32, i32) {
    %c0_i32 = arith.constant 0 : i32
    %c0_i32_0 = arith.constant 0 : i32
    %c0_i32_1 = arith.constant 0 : i32
    return %c0_i32, %c0_i32_0 : i32, i32
  }
  func.func @transform_4(%arg0: i32) -> (i32, i32, i32) {
    %c0_i32 = arith.constant 0 : i32
    %c0_i32_0 = arith.constant 0 : i32
    %c0_i32_1 = arith.constant 0 : i32
    return %arg0, %c0_i32, %c0_i32_0 : i32, i32, i32
  }
  func.func @transform_5(%arg0: i32) -> (i32, i32) {
    %c0_i32 = arith.constant 0 : i32
    %c0_i32_0 = arith.constant 0 : i32
    %c0_i32_1 = arith.constant 0 : i32
    return %c0_i32, %c0_i32_0 : i32, i32
  }
}

</mosaic_0001>

<bundles_post_ra>
// kernel: tpu_custom_call.1
= control target key start
LH: loop header
LB: loop body
LE: loop exit
PB: predicated region body
PF: predicated region fallthrough
CT: control target
= control target key end

     0   :  { %11 = vsyncpa [#allocation4], 0  ;;  %s646_s0 = inlined_call_operand.hbm [shape: f32[1,8,16], index: 0, kind: input, shape index: {}]   ;;  %s647_s1 = inlined_call_operand.hbm [shape: f32[8,32], index: 1, kind: input, shape index: {}]   ;;  %s648_s2 = inlined_call_operand.hbm [shape: f32[8,32], index: 2, kind: input, shape index: {}]   ;;  %s649_s3 = inlined_call_operand.hbm [shape: f32[128,128], index: 3, kind: input, shape index: {}]   ;;  %s650_s4 = inlined_call_operand.hbm [shape: f32[1,8,32], index: 4, kind: output, shape index: {0}]   ;;  %s651_s5 = inlined_call_operand.hbm [shape: f32[8,64], index: 5, kind: output, shape index: {1}]  }
   0x1   :  { %12 = vsyncpa [#allocation7], 0 }
   0x2   :  { %13 = vsyncpa [#allocation10], 0 }
   0x3   :  { %14 = vsyncpa [#allocation5], 0 }
   0x4   :  { %15 = vsyncpa [#allocation13], 0  ;;  %s505_s18 = smov [#allocation6]   ;;  %s506_s20 = smov [#allocation3]  }
   0x5   :  { %s32_s19 = sshll.u32 %s505_s18, 4  ;;  %s22_s21 = sshll.u32 %s506_s20, 4  ;;  %s33_s19 = int_to_ptr.vmem [resolvable:$true] %s32_s19  ;;  %s23_s21 = int_to_ptr.vmem [resolvable:$true] %s22_s21 }
   0x6   :  { %s363_s24 = scalar_lea.hbm %s647_s1, 128 }
   0x7   :  { %p364_p0 = scmp.ne.s32.totalorder %s647_s1, %s363_s24  ;;  %p367_p1 = scmp.lt.u32.totalorder %s363_s24, %s647_s1 }
   0x9   :  { %p369_p2 = pnand %p367_p1, %p364_p0 }
   0xb   :  { %372 = shalt.err (!%p369_p2)
}
   0xc   :  { %s373_s29 = scalar_lea.vmem %s33_s19, 128  ;;  %p378_p4 = scmp.lt.s32.totalorder %s33_s19, %s33_s19 }
   0xd   :  { %p374_p3 = scmp.ne.s32.totalorder %s33_s19, %s373_s29  ;;  %p379_p5 = scmp.lt.s32.totalorder %s373_s29, %s373_s29 }
   0xf   :  { %p380_p6 = por %p379_p5, %p378_p4 }
  0x11   :  { %p381_p7 = pnand %p380_p6, %p374_p3 }
  0x13   :  { %384 = shalt.err (!%p381_p7)
}
  0x14   :  { %35 = dma.hbm_to_vmem [thread:$0]  %s647_s1, 128, %s33_s19, [#allocation7]  }
  0x15   :  { %s385_s9 = scalar_lea.hbm %s646_s0, 128 }
  0x16   :  { %p386_p8 = scmp.ne.s32.totalorder %s646_s0, %s385_s9  ;;  %p389_p9 = scmp.lt.u32.totalorder %s385_s9, %s646_s0 }
  0x18   :  { %p391_p10 = pnand %p389_p9, %p386_p8 }
  0x1a   :  { %394 = shalt.err (!%p391_p10)
}
  0x1b   :  { %s395_s14 = scalar_lea.vmem %s23_s21, 128  ;;  %p400_p12 = scmp.lt.s32.totalorder %s23_s21, %s23_s21 }
  0x1c   :  { %p396_p11 = scmp.ne.s32.totalorder %s23_s21, %s395_s14  ;;  %p401_p13 = scmp.lt.s32.totalorder %s395_s14, %s395_s14 }
  0x1e   :  { %p402_p0 = por %p401_p13, %p400_p12 }
  0x20   :  { %p403_p1 = pnand %p402_p0, %p396_p11 }
  0x22   :  { %406 = shalt.err (!%p403_p1)
}
  0x23   :  { %25 = dma.hbm_to_vmem [thread:$0]  %s646_s0, 128, %s23_s21, [#allocation4]  }
  0x24   :  { %s507_s16 = smov [#allocation8]   ;;  %s508_s18 = smov [#allocation9]  }
  0x25   :  { %s42_s17 = sshll.u32 %s507_s16, 4  ;;  %s51_s19 = sshll.u32 %s508_s18, 4  ;;  %s43_s17 = int_to_ptr.vmem [resolvable:$true] %s42_s17  ;;  %s577_s19 = int_to_ptr.vmem [resolvable:$true] %s51_s19 }
  0x26   :  { %s407_s23 = scalar_lea.hbm %s648_s2, 128 }
  0x27   :  { %p408_p2 = scmp.ne.s32.totalorder %s648_s2, %s407_s23  ;;  %p411_p3 = scmp.lt.u32.totalorder %s407_s23, %s648_s2 }
  0x29   :  { %p413_p4 = pnand %p411_p3, %p408_p2 }
  0x2b   :  { %416 = shalt.err (!%p413_p4)
}
  0x2c   :  { %s417_s0 = scalar_lea.vmem %s43_s17, 128  ;;  %p422_p6 = scmp.lt.s32.totalorder %s43_s17, %s43_s17 }
  0x2d   :  { %p418_p5 = scmp.ne.s32.totalorder %s43_s17, %s417_s0  ;;  %p423_p7 = scmp.lt.s32.totalorder %s417_s0, %s417_s0 }
  0x2f   :  { %p424_p8 = por %p423_p7, %p422_p6 }
  0x31   :  { %p425_p9 = pnand %p424_p8, %p418_p5 }
  0x33   :  { %428 = shalt.err (!%p425_p9)
}
  0x34   :  { %45 = dma.hbm_to_vmem [thread:$0]  %s648_s2, 128, %s43_s17, [#allocation7]  }
  0x35   :  { %s429_s6 = scalar_lea.hbm %s649_s3, 2048 }
  0x36   :  { %p430_p10 = scmp.ne.s32.totalorder %s649_s3, %s429_s6  ;;  %p433_p11 = scmp.lt.u32.totalorder %s429_s6, %s649_s3 }
  0x38   :  { %p435_p12 = pnand %p433_p11, %p430_p10 }
  0x3a   :  { %438 = shalt.err (!%p435_p12)
}
  0x3b   :  { %s439_s11 = scalar_lea.vmem %s577_s19, 2048  ;;  %p444_p0 = scmp.lt.s32.totalorder %s577_s19, %s577_s19 }
  0x3c   :  { %p440_p13 = scmp.ne.s32.totalorder %s577_s19, %s439_s11  ;;  %p445_p1 = scmp.lt.s32.totalorder %s439_s11, %s439_s11 }
  0x3e   :  { %p446_p2 = por %p445_p1, %p444_p0 }
  0x40   :  { %p447_p3 = pnand %p446_p2, %p440_p13 }
  0x42   :  { %450 = shalt.err (!%p447_p3)
}
  0x43   :  { %s509_s2 = smov 128   ;;  %s510_s12 = smov 8  }
  0x44   :  { %57 = dma.hbm_to_vmem [thread:$0]  %s649_s3, 2048, %s577_s19, [#allocation10], %s509_s2, %s509_s2, %s510_s12  }
  0x45   :  { %495 = dma.done.wait [#allocation4], 128  }
  0x46   :  { %496 = vsyncadd [#allocation4], 4294967168 }
  0x47   :  { %497 = dma.done.wait [#allocation7], 256  }
  0x48   :  { %498 = vsyncadd [#allocation7], 4294967040 }
  0x49   :  { %499 = dma.done.wait [#allocation10], 2048  }
  0x4a   :  { %500 = vsyncadd [#allocation10], 4294965248  ;;  %v511_v0 = vmov 0.0|0.0   ;;  %v512_v1 = vmov 0.0   ;;  %vm513_vm0 = vmmov 0   ;;  %v75_v2 = vld [vmem:[#allocation6] sm:$0xff] }
  0x4b   :  { %313 = vmatprep.subr.bf16.mxu0 %v511_v0  ;;  %74 = vst [vmem:[#allocation2] sm:$0xff] %v512_v1  ;;  %310 = vmatprep.mubr.msk.f32.mxu0 %vm513_vm0, %v512_v1  ;;  %v95_v3 = vld [vmem:[#allocation9] sm:$0xff]  ;;  %s514_s1 = smov 16   ;;  %v96_v4 = vld [vmem:[#allocation9 + $0x8] sm:$0xff]  ;;  %v97_v5 = vld [vmem:[#allocation9 + $0x10] sm:$0xff]  ;;  %s515_s3 = smov 48  }
  0x4c   :  { %77 = vrot.lane.b32.xlu0 %v75_v2, %s514_s1  ;;  %v98_v6 = vld [vmem:[#allocation9 + $0x18] sm:$0xff]  ;;  %v314_v8 = vpack.c.bf16 %v96_v4, %v95_v3  ;;  %v99_v10 = vld [vmem:[#allocation9 + $0x20] sm:$0xff]  ;;  %v100_v11 = vld [vmem:[#allocation9 + $0x28] sm:$0xff]  ;;  %vm80_vm1 = vcmask 392320   ;;  %vm87_vm2 = vcmask 654720   ;;  %vm89_vm3 = vcmask 663168  }
  0x4d   :  { %v82_v7 = vld [vmem:[#allocation8] sm:$0xff]  ;;  %v317_v9 = vpack.c.bf16 %v98_v6, %v97_v5  ;;  %v320_v12 = vpack.c.bf16 %v100_v11, %v99_v10  ;;  %v101_v13 = vld [vmem:[#allocation9 + $0x30] sm:$0xff]  ;;  %v103_v16 = vld [vmem:[#allocation9 + $0x40] sm:$0xff]  ;;  %vm92_vm4 = vcmask 130048   ;;  %v516_v31 = vmov 1.0   ;;  %s517_s15 = smov 32  }
  0x4e   :  { %315 = vmatpush3.bf16.msra.mxu0 %v314_v8  ;;  %v102_v14 = vld [vmem:[#allocation9 + $0x38] sm:$0xff]  ;;  %v104_v17 = vld [vmem:[#allocation9 + $0x48] sm:$0xff]  ;;  %v105_v19 = vld [vmem:[#allocation9 + $0x50] sm:$0xff]  ;;  %s518_s16 = smov 112   ;;  %s519_s17 = smov 80   ;;  %vm224_vm5 = vcmask 261120  }
  0x4f   :  { %316 = vmatprep.subr.bf16.mxu0 %v511_v0  ;;  %v323_v15 = vpack.c.bf16 %v102_v14, %v101_v13  ;;  %v326_v18 = vpack.c.bf16 %v104_v17, %v103_v16  ;;  %v106_v20 = vld [vmem:[#allocation9 + $0x58] sm:$0xff]  ;;  %v107_v22 = vld [vmem:[#allocation9 + $0x60] sm:$0xff]  ;;  %v108_v23 = vld [vmem:[#allocation9 + $0x68] sm:$0xff]  ;;  %s520_s18 = smov 64   ;;  %s521_s19 = smov [#allocation11]   ;;  %vm227_vm6 = vcmask 523264  }
  0x50   :  { %84 = vrot.lane.b32.xlu0 %v82_v7, %s515_s3  ;;  %v329_v21 = vpack.c.bf16 %v106_v20, %v105_v19  ;;  %v332_v24 = vpack.c.bf16 %v108_v23, %v107_v22  ;;  %v109_v25 = vld [vmem:[#allocation9 + $0x70] sm:$0xff]  ;;  %v110_v26 = vld [vmem:[#allocation9 + $0x78] sm:$0xff]  ;;  %v91_v30 = vld [vmem:[#allocation3] sm:$0xff]  ;;  %s235_s20 = sshll.u32 %s521_s19, 4  ;;  %s522_s22 = smov [#allocation12]   ;;  %s236_s20 = int_to_ptr.vmem [resolvable:$true] %s235_s20 }
  0x51   :  { %v335_v27 = vpack.c.bf16 %v110_v26, %v109_v25  ;;  %s245_s23 = sshll.u32 %s522_s22, 4  ;;  %s451_s24 = scalar_lea.vmem %s236_s20, 128  ;;  %s612_s23 = int_to_ptr.vmem [resolvable:$true] %s245_s23 }
  0x52   :  { %318 = vmatpush3.bf16.msra.mxu0 %v317_v9  ;;  %p452_p4 = scmp.ne.s32.totalorder %s236_s20, %s451_s24  ;;  %p456_p5 = scmp.lt.s32.totalorder %s236_s20, %s236_s20 }
  0x53   :  { %319 = vmatprep.subr.bf16.mxu0 %v511_v0  ;;  %p457_p6 = scmp.lt.s32.totalorder %s451_s24, %s451_s24 }
  0x55   :  { %p458_p7 = por %p457_p6, %p456_p5 }
  0x56   :  { %321 = vmatpush3.bf16.msra.mxu0 %v320_v12 }
  0x57   :  { %322 = vmatprep.subr.bf16.mxu0 %v511_v0  ;;  %p459_p8 = pnand %p458_p7, %p452_p4 }
  0x5a   :  { %324 = vmatpush3.bf16.msra.mxu0 %v323_v15 }
  0x5b   :  { %325 = vmatprep.subr.bf16.mxu0 %v511_v0 }
  0x5e   :  { %327 = vmatpush3.bf16.msra.mxu0 %v326_v18 }
  0x5f   :  { %328 = vmatprep.subr.bf16.mxu0 %v511_v0 }
  0x62   :  { %330 = vmatpush3.bf16.msra.mxu0 %v329_v21 }
  0x63   :  { %331 = vmatprep.subr.bf16.mxu0 %v511_v0 }
  0x66   :  { %333 = vmatpush3.bf16.msra.mxu0 %v332_v24 }
  0x67   :  { %334 = vmatprep.subr.bf16.mxu0 %v511_v0 }
  0x6a   :  { %336 = vmatpush3.bf16.msra.mxu0 %v335_v27 }
  0xbe   :  { %v78_v28 = vpop.permute.xlu0 %77 }
  0xbf   :  { %81 = vst.msk [vmem:[#allocation2] sm:$0xff] %vm80_vm1, %v78_v28 }
  0xc2   :  { %v85_v29 = vpop.permute.xlu0 %84 }
  0xc3   :  { %88 = vst.msk [vmem:[#allocation2] sm:$0xff] %vm87_vm2, %v85_v29 }
  0xc4   :  { %90 = vst.msk [vmem:[#allocation2] sm:$0xff] %vm89_vm3, %v516_v31 }
  0xc5   :  { %93 = vst.msk [vmem:[#allocation2] sm:$0xff] %vm92_vm4, %v91_v30 }
  0xcc   :  { %v94_v32 = vld [vmem:[#allocation2] sm:$0xff] }
  0xcd   :  { %311 = vmatmul.mubr.f32.vlgmr.msra.gmra.mrb[0].mxu0 %v94_v32 }
 0x1a0   :  { %v177_v33 = vpop.f32.mrb[0].mxu0 }
 0x1a1   :  { %355 = vtanh.f32 %v177_v33  ;;  %v312_v34 = vpop.f32.mrb[1].mxu0  ;;  %v260_v36 = vmul.f32 -1.442695, %v177_v33 }
 0x1a3   :  { %357 = vpow2.f32 %v260_v36 }
 0x1ab   :  { %v356_v35 = vpop.eup %355 }
 0x1ac   :  { %194 = vrot.lane.b32.xlu1 %v356_v35, %s517_s15 }
 0x1ad   :  { %v358_v37 = vpop.eup %357 }
 0x1ae   :  { %v184_v38 = vadd.f32 1.0, %v358_v37 }
 0x1b0   :  { %189 = vrot.lane.b32.xlu1 %v94_v32, %s518_s16  ;;  %359 = vrcp.f32 %v184_v38 }
 0x1ba   :  { %v360_v39 = vpop.eup %359 }
 0x21e   :  { %v195_v40 = vpop.permute.xlu1 %194 }
 0x21f   :  { %v197_v41 = vmul.f32 %v360_v39, %v195_v40 }
 0x221   :  { %199 = vrot.lane.b32.xlu0 %v197_v41, %s517_s15 }
 0x222   :  { %v190_v42 = vpop.permute.xlu1 %189 }
 0x223   :  { %v192_v43 = vmul.f32 %v360_v39, %v190_v42 }
 0x293   :  { %v200_v44 = vpop.permute.xlu0 %199 }
 0x294   :  { %v202_v45 = vadd.f32 %v200_v44, %v192_v43 }
 0x296   :  { %361 = vtanh.f32 %v202_v45 }
 0x2a0   :  { %v362_v46 = vpop.eup %361 }
 0x2a1   :  { %205 = vrot.lane.b32.xlu1 %v362_v46, %s517_s15 }
 0x313   :  { %v206_v47 = vpop.permute.xlu1 %205 }
 0x314   :  { %v208_v48 = vmul.f32 %v360_v39, %v206_v47 }
 0x316   :  { %210 = vrot.lane.b32.xlu1 %v208_v48, %s519_s17  ;;  %221 = vrot.lane.b32.xlu0 %v208_v48, %s520_s18 }
 0x31a   :  { %216 = vrot.lane.b32.xlu0 %v202_v45, %s514_s1 }
 0x388   :  { %v211_v49 = vpop.permute.xlu1 %210  ;;  %v222_v50 = vpop.permute.xlu0 %221 }
 0x389   :  { %214 = vst.msk [vmem:[#allocation2] sm:$0xff] %vm80_vm1, %v211_v49  ;;  %v226_v51 = vsel %vm224_vm5, %v222_v50, %v202_v45 }
 0x38a   :  { %225 = vst.msk [vmem:[#allocation11] sm:$0xff] %vm224_vm5, %v222_v50 }
 0x38b   :  { %462 = shalt.err (!%p459_p8)
}
 0x38c   :  { %s463_s27 = scalar_lea.hbm %s650_s4, 128 }
 0x38d   :  { %p464_p9 = scmp.ne.s32.totalorder %s650_s4, %s463_s27  ;;  %p467_p10 = scmp.lt.u32.totalorder %s463_s27, %s650_s4 }
 0x38f   :  { %p469_p11 = pnand %p467_p10, %p464_p9 }
 0x391   :  { %472 = shalt.err (!%p469_p11)
}
 0x392   :  { %238 = dma.vmem_to_hbm [thread:$0]  %s236_s20, 128, %s650_s4, [#allocation5]   ;;  %228 = vst.msk [vmem:[#allocation12] sm:$0xff] %vm227_vm6, %v226_v51 }
 0x393   :  { %s473_s7 = scalar_lea.vmem %s612_s23, 128  ;;  %p478_p13 = scmp.lt.s32.totalorder %s612_s23, %s612_s23 }
 0x394   :  { %p474_p12 = scmp.ne.s32.totalorder %s612_s23, %s473_s7  ;;  %p479_p0 = scmp.lt.s32.totalorder %s473_s7, %s473_s7 }
 0x396   :  { %p480_p1 = por %p479_p0, %p478_p13 }
 0x398   :  { %p481_p2 = pnand %p480_p1, %p474_p12 }
 0x39a   :  { %484 = shalt.err (!%p481_p2)
}
 0x39b   :  { %s485_s10 = scalar_lea.hbm %s651_s5, 128 }
 0x39c   :  { %p486_p3 = scmp.ne.s32.totalorder %s651_s5, %s485_s10  ;;  %p489_p4 = scmp.lt.u32.totalorder %s485_s10, %s651_s5 }
 0x39e   :  { %p491_p5 = pnand %p489_p4, %p486_p3 }
 0x3a0   :  { %494 = shalt.err (!%p491_p5)
}
 0x3a1   :  { %248 = dma.vmem_to_hbm [thread:$0]  %s612_s23, 128, %s651_s5, [#allocation13]   ;;  %v217_v52 = vpop.permute.xlu0 %216 }
 0x3a2   :  { %220 = vst.msk [vmem:[#allocation2] sm:$0xff] %vm87_vm2, %v217_v52 }
 0x3a3   :  { %501 = dma.done.wait [#allocation5], 128  }
 0x3a4   :  { %502 = vsyncadd [#allocation5], 4294967168 }
 0x3a5   :  { %503 = dma.done.wait [#allocation13], 128  }
 0x3a6   :  { %504 = vsyncadd [#allocation13], 4294967168 }
 0x3a7   :  { %255 = vsyncpa [#allocation4], 1 }
 0x3a8   :  { %256 = vsyncpa [#allocation7], 1 }
 0x3a9   :  { %257 = vsyncpa [#allocation10], 1 }
 0x3aa   :  { %258 = vsyncpa [#allocation5], 1 }
 0x3ab   :  { %259 = vsyncpa [#allocation13], 1 }

</bundles_post_ra>
